<compile_context>
chip_gen: v6e
topology: v6e:2x2x1
jax: 0.10.0
libtpu: 0.0.40
codegen_flags: <defaults>
</compile_context>

<pallas_src>
import numpy as np
import jax
import jax.numpy as jnp
from jax.experimental import pallas as pl
from jax.experimental.pallas import tpu as pltpu

P1 = 2            # self.p1
P2 = 1            # self.p2
NORM_EPS = 1e-12  # F.normalize default eps (clamp_min on the L2 norm)


def _pow_p1(x):
    if P1 == 2:
        return x * x
    return x ** P1


# ----------------- Kernel 1: fused channel reduction (heavy, HBM-bound) -----------
def _channel_mean_kernel(fs_ref, ft_ref, gs_ref, gt_ref):
    # fs_ref: (bn, C_s, T)  ft_ref: (bn, C_t, T) in native dtype.
    # Cast on-chip, square, mean over channels -> f32 (bn, 1, T).
    fs = fs_ref[...].astype(jnp.float32)
    ft = ft_ref[...].astype(jnp.float32)
    gs_ref[...] = jnp.mean(_pow_p1(fs), axis=1, keepdims=True)
    gt_ref[...] = jnp.mean(_pow_p1(ft), axis=1, keepdims=True)


def _plan_channel_mean(n, bytes_per_lane, hw, vmem_budget=20 * 1024 * 1024):
    """Pick (batch rows/step, HW lanes/step, #HW tiles).

    bytes_per_lane: bytes of (both native-dtype inputs + both f32 outputs) per
    batch row per HW lane.  Working set is double-buffered (x2).
    """
    max_t = (vmem_budget // (2 * bytes_per_lane)) // 128 * 128
    max_t = max(128, min(1024, max_t))           # 512-1024 lanes ~ HBM roofline
    t = hw if hw <= max_t else max_t             # full extent, or 128-multiple tile
    n_hw = pl.cdiv(hw, t)                        # boundary tile -> masked stores
    bn = max(1, min(n, 8, vmem_budget // (2 * bytes_per_lane * t)))
    while n % bn:
        bn -= 1
    if n > 1 and n_hw * (n // bn) < 2:           # keep >=2 steps: megacore + pipeline
        bn = max(1, n // 2)
        while n % bn:
            bn -= 1
    return bn, t, n_hw


def _channel_mean(fs, ft):
    n, c_s, hw = fs.shape
    _, c_t, _ = ft.shape
    bytes_per_lane = c_s * fs.dtype.itemsize + c_t * ft.dtype.itemsize + 2 * 4
    bn, t, n_hw = _plan_channel_mean(n, bytes_per_lane, hw)

    working_set = 2 * bn * t * bytes_per_lane                    # double-buffered
    vmem_limit = int(min(max(working_set + 4 * 1024 * 1024,
                             16 * 1024 * 1024), 48 * 1024 * 1024))  # v7x-safe cap

    gs, gt = pl.pallas_call(
        _channel_mean_kernel,
        grid=(n // bn, n_hw),
        in_specs=(pl.BlockSpec((bn, c_s, t), lambda b, i: (b, 0, i)),
                  pl.BlockSpec((bn, c_t, t), lambda b, i: (b, 0, i))),
        # 3-D outputs keep the block's last-two dims (1, T): sublane dim == full
        # extent, lane dim a 128-multiple -> clean (mostly unmasked) stores.
        out_specs=(pl.BlockSpec((bn, 1, t), lambda b, i: (b, 0, i)),
                   pl.BlockSpec((bn, 1, t), lambda b, i: (b, 0, i))),
        out_shape=(jax.ShapeDtypeStruct((n, 1, hw), jnp.float32),
                   jax.ShapeDtypeStruct((n, 1, hw), jnp.float32)),
        compiler_params=pltpu.CompilerParams(
            dimension_semantics=("parallel", "parallel"),
            vmem_limit_bytes=vmem_limit),
    )(fs, ft)
    return gs.reshape(n, hw), gt.reshape(n, hw)


# ----------------- Kernel 2: normalize + L1 distance (tiny finisher) ---------------
def _pick_rows(n, hw, vmem_budget=8 * 1024 * 1024):
    per_row = hw * 4 * 2 * 2                     # gs + gt, f32, double-buffered
    cap = max(1, vmem_budget // per_row)
    if cap >= n:
        return n
    for bn in range(min(cap, n), 0, -1):         # prefer 8-aligned divisors of n
        if n % bn == 0 and (bn % 8 == 0 or bn == n):
            return bn
    for bn in range(min(cap, n), 0, -1):
        if n % bn == 0:
            return bn
    return 1


def _factor_loss(g_s, g_t):
    n, hw = g_s.shape
    bn = _pick_rows(n, hw)
    inv_denom = 1.0 / float(n * hw)

    def kernel(gs_ref, gt_ref, out_ref):
        b = pl.program_id(0)

        @pl.when(b == 0)
        def _():
            out_ref[0, 0] = jnp.float32(0.0)

        gs = gs_ref[...]                                             # (bn, HW) f32
        gt = gt_ref[...]
        # F.normalize: x / max(||x||, eps) == x * rsqrt(max(sumsq, eps^2)); rsqrt -> EUP.
        eps2 = jnp.float32(NORM_EPS * NORM_EPS)
        inv_s = jax.lax.rsqrt(jnp.maximum(jnp.sum(gs * gs, axis=-1, keepdims=True), eps2))
        inv_t = jax.lax.rsqrt(jnp.maximum(jnp.sum(gt * gt, axis=-1, keepdims=True), eps2))
        d = gs * inv_s - gt * inv_t
        if P2 == 1:
            part = jnp.sum(jnp.abs(d))
        else:
            # NOTE: FT distance |d|^p2; only differs from the module's signed
            # d**p2 for odd p2 > 1 (unused with the default p2 = 1).
            part = jnp.sum(jnp.abs(d) ** P2)
        out_ref[0, 0] += part

        @pl.when(b == pl.num_programs(0) - 1)
        def _():
            out_ref[0, 0] = out_ref[0, 0] * jnp.float32(inv_denom)

    out = pl.pallas_call(
        kernel,
        grid=(n // bn,),
        in_specs=(pl.BlockSpec((bn, hw), lambda b: (b, 0)),
                  pl.BlockSpec((bn, hw), lambda b: (b, 0))),
        out_specs=pl.BlockSpec(memory_space=pltpu.MemorySpace.SMEM),
        out_shape=jax.ShapeDtypeStruct((1, 1), jnp.float32),
        compiler_params=pltpu.CompilerParams(dimension_semantics=("arbitrary",)),
    )(g_s, g_t)
    return out[0, 0]


# ----------------- wrapper glue: adaptive pool branch + reshape --------------------
def _adaptive_avg_pool2d(x, out_h, out_w):
    # Mirrors torch.nn.functional.adaptive_avg_pool2d bin edges (static loops).
    _, _, h, w = x.shape
    rows = []
    for i in range(out_h):
        h0 = (i * h) // out_h
        h1 = -(-((i + 1) * h) // out_h)
        cols = []
        for j in range(out_w):
            w0 = (j * w) // out_w
            w1 = -(-((j + 1) * w) // out_w)
            cols.append(jnp.mean(x[:, :, h0:h1, w0:w1], axis=(2, 3)))
        rows.append(jnp.stack(cols, axis=-1))
    return jnp.stack(rows, axis=-2)


def factor_transfer_loss(f_s, f_t):
    # factor_loss(): mirrors the reference's comparison of shape[1] exactly.
    s_h, t_h = f_s.shape[1], f_t.shape[1]
    if s_h > t_h:
        f_s = _adaptive_avg_pool2d(f_s, t_h, t_h)
    elif s_h < t_h:
        f_t = _adaptive_avg_pool2d(f_t, s_h, s_h)
    # TODO(synk): if the pooled spatial sizes still differ the reference itself
    # would fail on the subtraction; only matching factor lengths are supported.

    n, c_s, h_s, w_s = f_s.shape
    _, c_t, h_t, w_t = f_t.shape
    hw = h_s * w_s
    assert h_t * w_t == hw and f_t.shape[0] == n, "factor shapes must match"

    # Keep native dtype (bf16/f32/...) -> no extra f32 HBM copy; cast on-chip.
    fs = f_s.reshape(n, c_s, hw)
    ft = f_t.reshape(n, c_t, hw)

    g_s, g_t = _channel_mean(fs, ft)       # heavy fused pass, reads f_s/f_t once
    return _factor_loss(g_s, g_t)          # tiny finisher on (N, HW) factors


if __name__ == "__main__":
    key = jax.random.PRNGKey(0)
    k1, k2 = jax.random.split(key)
    N, C, H, W = 2, 16, 16, 16
    f_s = jax.random.normal(k1, (N, C, H, W), dtype=jnp.float32)
    f_t = jax.random.normal(k2, (N, C, H, W), dtype=jnp.float32)

    # pure-JAX reference
    def _factor_ref(f):
        f = f.astype(jnp.float32)
        nb = f.shape[0]
        g = jnp.mean(f ** P1, axis=1).reshape(nb, -1)
        nrm = jnp.sqrt(jnp.sum(g * g, axis=-1, keepdims=True))
        return g / jnp.maximum(nrm, NORM_EPS)

    # f32 path
    loss = jax.block_until_ready(factor_transfer_loss(f_s, f_t))
    ref = jnp.mean(jnp.abs(_factor_ref(f_s) - _factor_ref(f_t)))
    np.testing.assert_allclose(np.asarray(loss), np.asarray(ref), rtol=1e-5, atol=1e-6)
    assert np.isfinite(float(loss))

    # bf16 path (native-dtype ingest, on-chip f32 accumulate)
    f_s_b, f_t_b = f_s.astype(jnp.bfloat16), f_t.astype(jnp.bfloat16)
    loss_b = jax.block_until_ready(factor_transfer_loss(f_s_b, f_t_b))
    ref_b = jnp.mean(jnp.abs(_factor_ref(f_s_b) - _factor_ref(f_t_b)))
    np.testing.assert_allclose(np.asarray(loss_b), np.asarray(ref_b), rtol=1e-4, atol=1e-5)
    assert np.isfinite(float(loss_b))

    print("KERNEL_OK")
</pallas_src>

<mosaic_0001>
module attributes {stable_mosaic.version = 11 : i64} {
  func.func @_channel_mean_kernel(%arg0: i32, %arg1: i32, %arg2: memref<1x16x256xf32, #tpu.memory_space<vmem>>, %arg3: memref<1x16x256xf32, #tpu.memory_space<vmem>>, %arg4: memref<1x1x256xf32, #tpu.memory_space<vmem>>, %arg5: memref<1x1x256xf32, #tpu.memory_space<vmem>>) attributes {dimension_semantics = [#tpu.dimension_semantics<parallel>, #tpu.dimension_semantics<parallel>], iteration_bounds = array<i64: 2, 1>, scalar_prefetch = 0 : i64, scratch_operands = 0 : i64, tpu.core_type = #tpu.core_type<tc>, window_params = [{transform_indices = @transform_0, window_bounds = array<i64: 1, 16, 256>}, {transform_indices = @transform_1, window_bounds = array<i64: 1, 16, 256>}, {transform_indices = @transform_2, window_bounds = array<i64: 1, 1, 256>}, {transform_indices = @transform_3, window_bounds = array<i64: 1, 1, 256>}]} {
    %c0 = arith.constant 0 : index
    %c0_0 = arith.constant 0 : index
    %c0_1 = arith.constant 0 : index
    %0 = vector.load %arg2[%c0, %c0_0, %c0_1] : memref<1x16x256xf32, #tpu.memory_space<vmem>>, vector<1x16x256xf32>
    %c0_2 = arith.constant 0 : index
    %c0_3 = arith.constant 0 : index
    %c0_4 = arith.constant 0 : index
    %1 = vector.load %arg3[%c0_2, %c0_3, %c0_4] : memref<1x16x256xf32, #tpu.memory_space<vmem>>, vector<1x16x256xf32>
    %2 = arith.mulf %0, %0 : vector<1x16x256xf32>
    %cst = arith.constant dense<0.000000e+00> : vector<1x256xf32>
    %3 = vector.multi_reduction <add>, %2, %cst [1] : vector<1x16x256xf32> to vector<1x256xf32>
    %4 = vector.shape_cast %3 : vector<1x256xf32> to vector<1x1x256xf32>
    %cst_5 = arith.constant 1.600000e+01 : f32
    %5 = vector.broadcast %cst_5 : f32 to vector<1x1x256xf32>
    %6 = arith.divf %4, %5 : vector<1x1x256xf32>
    %c0_6 = arith.constant 0 : index
    %c0_7 = arith.constant 0 : index
    %c0_8 = arith.constant 0 : index
    %7 = vector.load %arg4[%c0_6, %c0_7, %c0_8] : memref<1x1x256xf32, #tpu.memory_space<vmem>>, vector<1x1x256xf32>
    tpu.vector_store %arg4[%c0_6, %c0_7, %c0_8], %6 {strides = array<i32>} : memref<1x1x256xf32, #tpu.memory_space<vmem>>, vector<1x1x256xf32>,
    %8 = arith.mulf %1, %1 : vector<1x16x256xf32>
    %cst_9 = arith.constant dense<0.000000e+00> : vector<1x256xf32>
    %9 = vector.multi_reduction <add>, %8, %cst_9 [1] : vector<1x16x256xf32> to vector<1x256xf32>
    %10 = vector.shape_cast %9 : vector<1x256xf32> to vector<1x1x256xf32>
    %cst_10 = arith.constant 1.600000e+01 : f32
    %11 = vector.broadcast %cst_10 : f32 to vector<1x1x256xf32>
    %12 = arith.divf %10, %11 : vector<1x1x256xf32>
    %c0_11 = arith.constant 0 : index
    %c0_12 = arith.constant 0 : index
    %c0_13 = arith.constant 0 : index
    %13 = vector.load %arg5[%c0_11, %c0_12, %c0_13] : memref<1x1x256xf32, #tpu.memory_space<vmem>>, vector<1x1x256xf32>
    tpu.vector_store %arg5[%c0_11, %c0_12, %c0_13], %12 {strides = array<i32>} : memref<1x1x256xf32, #tpu.memory_space<vmem>>, vector<1x1x256xf32>,
    return
  }
  func.func @transform_0(%arg0: i32, %arg1: i32) -> (i32, i32, i32) {
    %c0_i32 = arith.constant 0 : i32
    %c0_i32_0 = arith.constant 0 : i32
    return %arg0, %c0_i32, %arg1 : i32, i32, i32
  }
  func.func @transform_1(%arg0: i32, %arg1: i32) -> (i32, i32, i32) {
    %c0_i32 = arith.constant 0 : i32
    %c0_i32_0 = arith.constant 0 : i32
    return %arg0, %c0_i32, %arg1 : i32, i32, i32
  }
  func.func @transform_2(%arg0: i32, %arg1: i32) -> (i32, i32, i32) {
    %c0_i32 = arith.constant 0 : i32
    %c0_i32_0 = arith.constant 0 : i32
    return %arg0, %c0_i32, %arg1 : i32, i32, i32
  }
  func.func @transform_3(%arg0: i32, %arg1: i32) -> (i32, i32, i32) {
    %c0_i32 = arith.constant 0 : i32
    %c0_i32_0 = arith.constant 0 : i32
    return %arg0, %c0_i32, %arg1 : i32, i32, i32
  }
}

</mosaic_0001>

<bundles_post_ra>
// kernel: tpu_custom_call.1
= control target key start
LH: loop header
LB: loop body
LE: loop exit
PB: predicated region body
PF: predicated region fallthrough
CT: control target
= control target key end

     0   :  { %s1051_s0 = inlined_call_operand.hbm [shape: f32[2,16,256], index: 0, kind: input, shape index: {}]   ;;  %s1052_s1 = inlined_call_operand.hbm [shape: f32[2,16,256], index: 1, kind: input, shape index: {}]   ;;  %s1053_s2 = inlined_call_operand.hbm [shape: f32[2,1,256], index: 2, kind: output, shape index: {0}]   ;;  %s1054_s3 = inlined_call_operand.hbm [shape: f32[2,1,256], index: 3, kind: output, shape index: {1}]  }
   0x1   :  { %1055 = sst [smem:[#allocation14_spill]] %s1051_s0 }
   0x2   :  { %9 = vsyncpa [#allocation3], 0 }
   0x3   :  { %11 = vsyncpa [#allocation3 + $0x1], 0 }
   0x4   :  { %12 = vsyncpa [#allocation6], 0 }
   0x5   :  { %14 = vsyncpa [#allocation6 + $0x1], 0 }
   0x6   :  { %15 = vsyncpa [#allocation4], 0 }
   0x7   :  { %17 = vsyncpa [#allocation4 + $0x1], 0 }
   0x8   :  { %18 = vsyncpa [#allocation9], 0 }
   0x9   :  { %20 = vsyncpa [#allocation9 + $0x1], 0  ;;  %s843_s12 = smov 0   ;;  %s845_s13 = smov 0  }
   0xa   :  { %s847_s14 = smov 0   ;;  %s849_s15 = smov 0  }
   0xb   :  { %s851_s16 = smov 0   ;;  %s853_s17 = smov 0  }
   0xc LB: > { %s542_s18 = sadd.s32 4294967295, %s814_s17   ;;  %s543_s19 = sadd.s32 4294967294, %s814_s17   ;;  %s814_s17 = sphi %s853_s17, %s26_s17   ;;  %s810_s16 = sphi %s851_s16, %s1067_s16   ;;  %s806_s15 = sphi %s849_s15, %s1066_s15   ;;  %s802_s14 = sphi %s847_s14, %s1065_s14   ;;  %s798_s13 = sphi %s845_s13, %s1064_s13   ;;  %s794_s12 = sphi %s843_s12, %s1063_s12  }
   0xd   : > { %s38_s20 = sadd.s32 1, %s810_s16  ;;  %s47_s21 = sadd.s32 1, %s802_s14 }
   0xe   : > { %p40_p0 = scmp.ge.s32.totalorder %s38_s20, 2  ;;  %p54_p1 = scmp.ne.s32.totalorder %s802_s14, %s798_s13 }
   0xf   : > { %p55_p2 = scmp.eq.s32.totalorder %s814_s17, 0  ;;  %p60_p3 = scmp.ne.s32.totalorder %s798_s13, %s794_s12 }
  0x10   : > { %s1069_s20 = smov (%p40_p0, %s38_s20), 0  ;;  %p61_p5 = scmp.eq.s32.totalorder %s542_s18, 0 }
  0x11   : > { %p884_p4 = por %p55_p2, %p54_p1  ;;  %s42_s23 = ssub.s32 %s810_s16, %s1069_s20 }
  0x12   : > { %p114_p6 = scmp.eq.s32.totalorder %s542_s18, 1  ;;  %p45_p7 = scmp.eq.s32.totalorder %s42_s23, 0 }
  0x13   : > { %p890_p8 = por %p61_p5, %p60_p3  ;;  %p120_p10 = scmp.eq.s32.totalorder %s543_s19, 1 }
  0x14   : > { %p894_p9 = por %p114_p6, %p54_p1  ;;  %p545_p12 = scmp.ge.s32.totalorder %s814_s17, 2 }
  0x15   : > { %s899_s26 = scalar_select %p45_p7, %s802_s14, %s47_s21  }
  0x16   : > { %p901_p11 = por %p120_p10, %p60_p3  ;;  %p591_p13 = scmp.lt.s32.totalorder %s814_s17, 2 }
  0x17   : > { %s908_s28 = sand.u32 1, %s802_s14   ;;  %s565_s30 = sshll.u32 %s810_s16, 9 }
  0x18   : > { %s546_s29 = sshll.u32 %s908_s28, 5  ;;  %s1060_s0 = sld [smem:[#allocation14_spill]] }
  0x19   : > { %s172_s7 = scalar_lea.vmem [#allocation2], %s546_s29  ;;  %p921_p0 = pnand %p591_p13, %p884_p4 }
  0x1a   : > { %s181_s8 = sshll.u32 %s172_s7, 4  ;;  %p552_p1 = scmp.ge.s32.totalorder %s814_s17, 1  ;;  %s182_s8 = int_to_ptr.vmem [resolvable:$true] %s181_s8 }
  0x1b   : > { %s169_s10 = scalar_lea.sflag [#allocation3], %s908_s28  ;;  %p646_p2 = pneg %p921_p0 }
  0x1c   : > { %s657_s11 = scalar_lea.vmem %s182_s8, 512  ;;  %s816_s18 = smov [#allocation2]  }
  0x1d   : > { %p658_p3 = scmp.ne.s32.totalorder %s182_s8, %s657_s11  ;;  %s662_s19 = sshll.u32 %s816_s18, 4  ;;  %s663_s19 = int_to_ptr.vmem [resolvable:$false] %s662_s19 }
  0x1e   : > { %s180_s6 = scalar_lea.hbm %s1060_s0, %s565_s30  ;;  %s664_s21 = scalar_lea.vmem %s663_s19, 1024 }
  0x1f   : > { %p660_p5 = pnand %p658_p3, %p646_p2  ;;  %p665_p4 = scmp.lt.s32.totalorder %s182_s8, %s663_s19 }
  0x20   : > { %p666_p7 = scmp.lt.s32.totalorder %s664_s21, %s657_s11 }
  0x21   : > { %p661_p6 = pneg %p660_p5 }
  0x22   : > { %p667_p10 = por %p666_p7, %p665_p4 }
  0x24   : > { %p668_p13 = pnand %p667_p10, %p661_p6 }
  0x26   : > { %671 = shalt.err (!%p668_p13)
}
  0x27   : > { %s817_s22 = smov 256   ;;  %s818_s23 = smov 16  }
  0x28   : > { %580 = dma.hbm_to_vmem [thread:$0]  (!%p921_p0), %s180_s6, 512, %s182_s8, %s169_s10, %s817_s22, %s817_s22, %s818_s23  }
  0x29   : > { %p212_p3 = scmp.lt.s32.totalorder %s814_s17, 3  ;;  %s203_s7 = scalar_lea.hbm %s1052_s1, %s565_s30 }
  0x2a   : > { %s195_s18 = scalar_lea.vmem [#allocation5], %s546_s29  ;;  %s192_s21 = scalar_lea.sflag [#allocation6], %s908_s28 }
  0x2b   : > { %p942_p5 = pnand %p552_p1, %p212_p3  ;;  %s204_s19 = sshll.u32 %s195_s18, 4  ;;  %s205_s19 = int_to_ptr.vmem [resolvable:$true] %s204_s19 }
  0x2c   : > { %s685_s0 = scalar_lea.vmem %s205_s19, 512  ;;  %s819_s6 = smov [#allocation5]  }
  0x2d   : > { %p686_p6 = scmp.ne.s32.totalorder %s205_s19, %s685_s0  ;;  %s690_s8 = sshll.u32 %s819_s6, 4  ;;  %s691_s8 = int_to_ptr.vmem [resolvable:$false] %s690_s8 }
  0x2e   : > { %s692_s30 = scalar_lea.vmem %s691_s8, 1024  ;;  %p693_p10 = scmp.lt.s32.totalorder %s205_s19, %s691_s8 }
  0x2f   : > { %p688_p4 = pnand %p686_p6, %p646_p2  ;;  %p694_p1 = scmp.lt.s32.totalorder %s692_s30, %s685_s0 }
  0x31   : > { %p689_p7 = pneg %p688_p4  ;;  %p695_p13 = por %p694_p1, %p693_p10 }
  0x33   : > { %p696_p3 = pnand %p695_p13, %p689_p7 }
  0x35   : > { %699 = shalt.err (!%p696_p3)
}
  0x36   : > { %583 = dma.hbm_to_vmem [thread:$0]  (!%p921_p0), %s203_s7, 512, %s205_s19, %s192_s21, %s817_s22, %s817_s22, %s818_s23  }
  0x37   : > { %216 = sbr.rel (%p942_p5) target bundleno = 125 (0x7d), region = 28  ;;  %s957_s28 = sand.u32 (!%p942_p5), 1, %s798_s13  }
  0x38   : > { %s553_s29 = sshll.u32 (!%p942_p5), %s957_s28, 5  ;;  %s219_s10 = scalar_lea.sflag (!%p942_p5), [#allocation3], %s957_s28 }
  0x39   : > { %s222_s4 = scalar_lea.vmem (!%p942_p5), [#allocation2], %s553_s29 }
  0x3c   : > { %777 = dma.done.wait (%p890_p8), %s219_s10, 512  }
  0x3d   : > { %779 = vsyncadd (%p890_p8), %s219_s10, 4294966784  ;;  %s228_s0 = scalar_lea.sflag [#allocation6], %s957_s28  ;;  %s231_s9 = scalar_lea.vmem [#allocation5], %s553_s29 }
  0x3e   : > { %781 = dma.done.wait (%p890_p8), %s228_s0, 512  }
  0x3f   : > { %783 = vsyncadd (%p890_p8), %s228_s0, 4294966784  ;;  %v268_v0 = vld [vmem:[%s222_s4] sm:$0xff]  ;;  %v269_v1 = vld [vmem:[%s222_s4 + $0x8] sm:$0xff]  ;;  %v820_v30 = vmov 1966171168   ;;  %v303_v32 = vlaneseq  ;;  %s555_s24 = sshll.u32 %s957_s28, 1 }
  0x40   : > { %v270_v2 = vld [vmem:[%s222_s4 + $0x10] sm:$0xff]  ;;  %v271_v3 = vld [vmem:[%s222_s4 + $0x18] sm:$0xff]  ;;  %v276_v4 = vmul.f32 %v268_v0, %v268_v0  ;;  %v277_v5 = vmul.f32 %v269_v1, %v269_v1  ;;  %v272_v7 = vld [vmem:[%s231_s9] sm:$0xff]  ;;  %v301_v31 = vunpack.c.l.s4 %v820_v30  ;;  %s256_s22 = scalar_lea.vmem [#allocation7], %s555_s24  ;;  %s263_s5 = scalar_lea.vmem [#allocation8], %s555_s24 }
  0x41   : > { %v278_v6 = vmul.f32 %v270_v2, %v270_v2  ;;  %v273_v8 = vld [vmem:[%s231_s9 + $0x8] sm:$0xff]  ;;  %v279_v9 = vmul.f32 %v271_v3, %v271_v3  ;;  %v274_v10 = vld [vmem:[%s231_s9 + $0x10] sm:$0xff]  ;;  %v275_v11 = vld [vmem:[%s231_s9 + $0x18] sm:$0xff]  ;;  %v320_v12 = vmul.f32 %v272_v7, %v272_v7  ;;  %v304_v42 = vshrl.u32 %v303_v32, 7  ;;  %s381_s23 = sshll.u32 %s256_s22, 4  ;;  %s397_s7 = sshll.u32 %s263_s5, 4  ;;  %s972_s23 = int_to_ptr.vmem [resolvable:$true] %s381_s23  ;;  %s974_s7 = int_to_ptr.vmem [resolvable:$true] %s397_s7 }
  0x42   : > { %v321_v13 = vmul.f32 %v273_v8, %v273_v8  ;;  %v322_v15 = vmul.f32 %v274_v10, %v274_v10  ;;  %v323_v16 = vmul.f32 %v275_v11, %v275_v11  ;;  %v302_v41 = vunpack.c.0.s8 %v301_v31  ;;  %s567_s11 = sshll.u32 %s806_s15, 5  ;;  %s360_s30 = scalar_lea.sflag [#allocation4], %s957_s28 }
  0x43   : > { %v280_v14 = vadd.f32 %v278_v6, %v276_v4  ;;  %v287_v17 = vadd.f32 %v279_v9, %v277_v5  ;;  %vm317_vm0 = vcmp.lt.s32.totalorder %v303_v32, 256  ;;  %s979_s21 = scalar_lea.hbm %s1053_s2, %s567_s11  ;;  %s984_s15 = scalar_lea.hbm %s1054_s3, %s567_s11 }
  0x44   : > { %v324_v19 = vadd.f32 %v322_v15, %v320_v12  ;;  %v331_v20 = vadd.f32 %v323_v16, %v321_v13  ;;  %v305_v51 = vsub.s32 %v302_v41, %v304_v42  ;;  %s700_s29 = scalar_lea.vmem %s972_s23, 32  ;;  %s821_s10 = smov [#allocation7]  }
  0x45   : > { %v281_v18 = vrot.slane %v280_v14, 4  ;;  %v288_v21 = vrot.slane %v287_v17, 4  ;;  %p701_p8 = scmp.ne.s32.totalorder %s972_s23, %s700_s29  ;;  %s704_s4 = sshll.u32 %s821_s10, 4  ;;  %s705_s4 = int_to_ptr.vmem [resolvable:$false] %s704_s4 }
  0x46   : > { %v325_v23 = vrot.slane %v324_v19, 4  ;;  %v332_v24 = vrot.slane %v331_v20, 4  ;;  %s706_s0 = scalar_lea.vmem %s705_s4, 64  ;;  %p707_p5 = scmp.lt.s32.totalorder %s972_s23, %s705_s4 }
  0x47   : > { %v282_v22 = vadd.f32 %v281_v18, %v280_v14  ;;  %v289_v25 = vadd.f32 %v288_v21, %v287_v17  ;;  %p702_p0 = pnand %p701_p8, %p894_p9  ;;  %p708_p6 = scmp.lt.s32.totalorder %s706_s0, %s700_s29 }
  0x48   : > { %v326_v27 = vadd.f32 %v325_v23, %v324_v19  ;;  %v333_v28 = vadd.f32 %v332_v24, %v331_v20 }
  0x49   : > { %v283_v26 = vrot.slane %v282_v22, 2  ;;  %v290_v29 = vrot.slane %v289_v25, 2  ;;  %p703_p2 = pneg %p702_p0  ;;  %p709_p4 = por %p708_p6, %p707_p5 }
  0x4a   : > { %v327_v34 = vrot.slane %v326_v27, 2  ;;  %v334_v35 = vrot.slane %v333_v28, 2 }
  0x4b   : > { %v284_v33 = vadd.f32 %v283_v26, %v282_v22  ;;  %v291_v36 = vadd.f32 %v290_v29, %v289_v25  ;;  %p710_p7 = pnand %p709_p4, %p703_p2 }
  0x4c   : > { %v328_v38 = vadd.f32 %v327_v34, %v326_v27  ;;  %v335_v39 = vadd.f32 %v334_v35, %v333_v28 }
  0x4d   : > { %v285_v37 = vrot.slane %v284_v33, 1  ;;  %v292_v40 = vrot.slane %v291_v36, 1 }
  0x4e   : > { %v329_v44 = vrot.slane %v328_v38, 1  ;;  %v336_v45 = vrot.slane %v335_v39, 1 }
  0x4f   : > { %v286_v43 = vadd.f32 %v285_v37, %v284_v33  ;;  %v293_v46 = vadd.f32 %v292_v40, %v291_v36 }
  0x50   : > { %v330_v48 = vadd.f32 %v329_v44, %v328_v38  ;;  %v337_v49 = vadd.f32 %v336_v45, %v335_v39 }
  0x51   : > { %v295_v47 = vmul.f32 0.0625, %v286_v43  ;;  %v296_v50 = vmul.f32 0.0625, %v293_v46 }
  0x52   : > { %v338_v52 = vmul.f32 0.0625, %v330_v48  ;;  %v339_v53 = vmul.f32 0.0625, %v337_v49 }
  0x53   : > { %v299_v54 = vcombine.low %v295_v47, %v296_v50 }
  0x54   : > { %v342_v55 = vcombine.low %v338_v52, %v339_v53 }
  0x55   : > { %v306_v56 = vrot.slane %v299_v54, %v305_v51 }
  0x56   : > { %v349_v57 = vrot.slane %v342_v55, %v305_v51 }
  0x57   : > { %v313_v58 = vrot.slane %v306_v56, %v305_v51 }
  0x58   : > { %v356_v59 = vrot.slane %v349_v57, %v305_v51 }
  0x59   : > { %319 = vst.msk [vmem:[%s256_s22] sm:$0x3] %vm317_vm0, %v313_v58 }
  0x5a   : > { %358 = vst.msk [vmem:[%s263_s5] sm:$0x3] %vm317_vm0, %v356_v59 }
  0x5b   : > { %713 = shalt.err (!%p710_p7)
}
  0x5c   : > { %s714_s9 = scalar_lea.hbm %s979_s21, 32  ;;  %s718_s5 = scalar_lea.hbm %s1053_s2, 64 }
  0x5d   : > { %p715_p10 = scmp.ne.s32.totalorder %s979_s21, %s714_s9  ;;  %p719_p3 = scmp.lt.s32.totalorder %s979_s21, %s1053_s2 }
  0x5e   : > { %p720_p8 = scmp.lt.s32.totalorder %s718_s5, %s714_s9 }
  0x5f   : > { %p716_p1 = pnand %p715_p10, %p894_p9 }
  0x60   : > { %p721_p0 = por %p720_p8, %p719_p3 }
  0x61   : > { %p717_p13 = pneg %p716_p1 }
  0x63   : > { %p722_p2 = pnand %p721_p0, %p717_p13 }
  0x65   : > { %725 = shalt.err (!%p722_p2)
}
  0x66   : > { %573 = dma.vmem_to_hbm [thread:$0]  (%p894_p9), %s972_s23, 32, %s979_s21, %s360_s30  }
  0x67   : > { %s365_s19 = scalar_lea.sflag [#allocation9], %s957_s28  ;;  %s726_s6 = scalar_lea.vmem %s974_s7, 32 }
  0x68   : > { %p727_p5 = scmp.ne.s32.totalorder %s974_s7, %s726_s6  ;;  %s822_s8 = smov [#allocation8]  }
  0x69   : > { %s730_s29 = sshll.u32 %s822_s8, 4  ;;  %s731_s29 = int_to_ptr.vmem [resolvable:$false] %s730_s29 }
  0x6a   : > { %p728_p6 = pnand %p727_p5, %p894_p9  ;;  %s732_s10 = scalar_lea.vmem %s731_s29, 64 }
  0x6b   : > { %p733_p7 = scmp.lt.s32.totalorder %s974_s7, %s731_s29  ;;  %p734_p10 = scmp.lt.s32.totalorder %s732_s10, %s726_s6 }
  0x6c   : > { %p729_p4 = pneg %p728_p6 }
  0x6d   : > { %p735_p1 = por %p734_p10, %p733_p7 }
  0x6f   : > { %p736_p13 = pnand %p735_p1, %p729_p4 }
  0x71   : > { %739 = shalt.err (!%p736_p13)
}
  0x72   : > { %s740_s23 = scalar_lea.hbm %s984_s15, 32  ;;  %s744_s30 = scalar_lea.hbm %s1054_s3, 64 }
  0x73   : > { %p741_p3 = scmp.ne.s32.totalorder %s984_s15, %s740_s23  ;;  %p745_p2 = scmp.lt.s32.totalorder %s984_s15, %s1054_s3 }
  0x74   : > { %p746_p5 = scmp.lt.s32.totalorder %s744_s30, %s740_s23 }
  0x75   : > { %p742_p8 = pnand %p741_p3, %p894_p9 }
  0x76   : > { %p747_p6 = por %p746_p5, %p745_p2 }
  0x77   : > { %p743_p0 = pneg %p742_p8 }
  0x79   : > { %p748_p4 = pnand %p747_p6, %p743_p0 }
  0x7b   : > { %751 = shalt.err (!%p748_p4)
}
  0x7c   : > { %574 = dma.vmem_to_hbm [thread:$0]  (%p894_p9), %s974_s7, 32, %s984_s15, %s365_s19  }
  0x7d PF: > { %s409_s9 = sand.u32 1, %s794_s12   ;;  %p585_p7 = pnand %p545_p12, %p901_p11 }
  0x7e   : > { %s410_s24 = scalar_lea.sflag [#allocation4], %s409_s9 }
  0x7f   : > { %p586_p10 = pneg %p585_p7 }
  0x81   : > { %785 = dma.done.wait (%p586_p10), %s410_s24, 32  }
  0x82   : > { %787 = vsyncadd (%p586_p10), %s410_s24, 4294967264  ;;  %s419_s22 = scalar_lea.sflag [#allocation9], %s409_s9 }
  0x83   : > { %789 = dma.done.wait (%p586_p10), %s419_s22, 32  }
  0x84   : > { %791 = vsyncadd (%p586_p10), %s419_s22, 4294967264  ;;  %s26_s17 = sadd.s32 1, %s814_s17   ;;  %s1063_s12 = smov %s798_s13 }
  0x85   : > { %p23_p1 = scmp.ge.s32.totalorder %s26_s17, 4   ;;  %s1064_s13 = smov %s802_s14 }
  0x86   : > { %s1065_s14 = smov %s899_s26  ;;  %s1066_s15 = smov %s810_s16 }
  0x87   : > { %s1067_s16 = smov %s1069_s20  ;;  %25 = sbr.rel (!%p23_p1) target bundleno = 12 (0xc), region = 103 }
  0x8c   :  { %424 = vsyncpa [#allocation3], 1 }
  0x8d   :  { %426 = vsyncpa [#allocation3 + $0x1], 1 }
  0x8e   :  { %427 = vsyncpa [#allocation6], 1 }
  0x8f   :  { %429 = vsyncpa [#allocation6 + $0x1], 1 }
  0x90   :  { %430 = vsyncpa [#allocation4], 1 }
  0x91   :  { %432 = vsyncpa [#allocation4 + $0x1], 1 }
  0x92   :  { %433 = vsyncpa [#allocation9], 1 }
  0x93   :  { %435 = vsyncpa [#allocation9 + $0x1], 1 }

</bundles_post_ra>
